<compile_context>
chip_gen: v7x
topology: tpu7x:2x2x1
jax: 0.10.0
libtpu: 0.0.40
codegen_flags: <defaults>
</compile_context>

<pallas_src>
import functools

import jax
import jax.numpy as jnp
from jax.experimental import pallas as pl
from jax.experimental.pallas import tpu as pltpu

H_PAD = 128          # hidden dim padded to one full lane tile
_B1_ROW = 0          # b1 at sublane row 0   (8-aligned, lane 0)
_B2_ROW = 8          # b2 at sublane row 8   (8-aligned, lane 0)
_W1_OFF = 16         # w1^T starts at row 16 (8-aligned)


def _round_up(n, m):
    return (n + m - 1) // m * m


def _toy_model_kernel(x_ref, p_ref, o_ref, *, in_dim, h_pad, out_dim, w1_off, w2_off):
    x = x_ref[...]                                       # (B, in_dim), f32

    # Static, aligned sub-views of the single packed parameter buffer.
    b1 = p_ref[_B1_ROW:_B1_ROW + 1, :]                   # (1, h_pad)      lane 0, row 0
    b2 = p_ref[_B2_ROW:_B2_ROW + 1, :out_dim]            # (1, out_dim)    lane 0, row 8
    w1 = p_ref[w1_off:w1_off + in_dim, :]                # (in_dim, h_pad) pre-transposed
    w2 = p_ref[w2_off:w2_off + h_pad, :]                 # (h_pad, h_pad)  pre-transposed

    # fc1 + bias + ReLU on a dense (B, 128) tile (padded hidden units stay exactly 0).
    h = jnp.dot(x, w1, preferred_element_type=jnp.float32)
    h = jnp.maximum(h + b1, 0.0)                         # (B, h_pad)

    # fc2: dense MXU matmul, then slice the real logits (lane-0-aligned) + bias.
    logits = jnp.dot(h, w2, preferred_element_type=jnp.float32)[:, :out_dim] + b2

    # Numerically stable LogSoftmax over dim=1, in f32 (exp/log -> EUP, max/sum -> XLU).
    m = jnp.max(logits, axis=-1, keepdims=True)
    shifted = logits - m
    lse = jnp.log(jnp.sum(jnp.exp(shifted), axis=-1, keepdims=True))
    o_ref[...] = (shifted - lse).astype(o_ref.dtype)


def pack_params(w1, b1, w2, b2, h_pad=H_PAD):
    """One-time (model-init) packing of all parameters into a single aligned buffer.

    Layout (lanes = h_pad = 128, all sections start at 8-aligned sublane rows, lane 0):
      row 0            : b1 (zero-padded to h_pad lanes)
      row 8            : b2 (zero-padded to h_pad lanes)
      rows 16..16+in   : w1^T, shape (in_dim, h_dim) zero-padded to h_pad lanes
      rows w2_off..+H  : w2^T, shape (h_dim, out_dim) zero-padded to (h_pad, h_pad)
    """
    h_dim, in_dim = w1.shape
    out_dim = w2.shape[0]
    assert h_dim <= h_pad and out_dim <= h_pad
    w2_off = _W1_OFF + _round_up(in_dim, 8)
    rows = w2_off + h_pad

    buf = jnp.zeros((rows, h_pad), jnp.float32)
    buf = buf.at[_B1_ROW, :h_dim].set(b1.astype(jnp.float32))
    buf = buf.at[_B2_ROW, :out_dim].set(b2.astype(jnp.float32))
    buf = buf.at[_W1_OFF:_W1_OFF + in_dim, :h_dim].set(w1.T.astype(jnp.float32))
    buf = buf.at[w2_off:w2_off + h_dim, :out_dim].set(w2.T.astype(jnp.float32))
    return buf


def toy_model_forward(x, params, out_dim):
    """Forward = exactly one pallas_call with 2 inputs (x + packed params).

    x: (B, in_dim) f32; params: pack_params(...) output. Matches PyTorch ToyModel:
    log_softmax(relu(x @ W1.T + b1) @ W2.T + b2, dim=1).
    """
    B, in_dim = x.shape
    h_pad = params.shape[1]
    w1_off = _W1_OFF
    w2_off = w1_off + _round_up(in_dim, 8)
    assert params.shape[0] == w2_off + h_pad, "params buffer does not match x's in_dim"

    vmem = pl.BlockSpec(memory_space=pltpu.MemorySpace.VMEM)
    cost = pl.CostEstimate(
        flops=2 * B * (in_dim * h_pad + h_pad * h_pad) + 6 * B * out_dim,
        transcendentals=B * (out_dim + 1),
        bytes_accessed=4 * (x.size + params.size + B * out_dim),
    )
    kernel = functools.partial(
        _toy_model_kernel,
        in_dim=in_dim, h_pad=h_pad, out_dim=out_dim,
        w1_off=w1_off, w2_off=w2_off,
    )
    # Single full-block invocation: optimal for small B on all generations. If B grows,
    # add a 1-D batch grid (constant index_map for params) with
    # dimension_semantics=("parallel",) so v7x's 2 TCs split it; keep it ungridded on
    # v5e/v6e until one block exceeds the scoped VMEM limit.
    return pl.pallas_call(
        kernel,
        out_shape=jax.ShapeDtypeStruct((B, out_dim), jnp.float32),
        in_specs=[vmem, vmem],
        out_specs=vmem,
        cost_estimate=cost,
    )(x, params)


if __name__ == "__main__":
    # ToyModel(in_dim=32, out_dim=10, h_dim=5), batch=8
    batch, in_dim, h_dim, out_dim = 8, 32, 5, 10

    key = jax.random.PRNGKey(0)
    kx, k1, k2, k3, k4 = jax.random.split(key, 5)

    x = jax.random.normal(kx, (batch, in_dim), dtype=jnp.float32)
    # Deterministic parameter init (uniform, akin to PyTorch's default Linear init scale).
    w1 = jax.random.uniform(k1, (h_dim, in_dim), jnp.float32, -1.0, 1.0) / jnp.sqrt(in_dim)
    b1 = jax.random.uniform(k2, (h_dim,), jnp.float32, -1.0, 1.0) / jnp.sqrt(in_dim)
    w2 = jax.random.uniform(k3, (out_dim, h_dim), jnp.float32, -1.0, 1.0) / jnp.sqrt(h_dim)
    b2 = jax.random.uniform(k4, (out_dim,), jnp.float32, -1.0, 1.0) / jnp.sqrt(h_dim)

    # Model-init-time packing (NOT part of the per-call forward path).
    params = jax.block_until_ready(pack_params(w1, b1, w2, b2))

    out = toy_model_forward(x, params, out_dim)
    out = jax.block_until_ready(out)

    # Reference check against pure-JAX forward (PyTorch semantics).
    h_ref = jnp.maximum(x @ w1.T + b1, 0.0)
    logits_ref = h_ref @ w2.T + b2
    ref = jax.nn.log_softmax(logits_ref, axis=1)
    assert out.shape == (batch, out_dim)
    assert bool(jnp.all(jnp.abs(out - ref) < 1e-5))
    # Rows of exp(log_softmax) must sum to 1.
    row_sums = jnp.sum(jnp.exp(out), axis=1)
    assert bool(jnp.all(jnp.abs(row_sums - 1.0) < 1e-5))

    print("KERNEL_OK")
</pallas_src>

<mosaic_0001>
module attributes {stable_mosaic.version = 11 : i64} {
  func.func @_toy_model_kernel(%arg0: memref<8x32xf32, #tpu.memory_space<vmem>>, %arg1: memref<176x128xf32, #tpu.memory_space<vmem>>, %arg2: memref<8x10xf32, #tpu.memory_space<vmem>>) attributes {dimension_semantics = [], scalar_prefetch = 0 : i64, scratch_operands = 0 : i64, tpu.core_type = #tpu.core_type<tc>} {
    %c0 = arith.constant 0 : index
    %c0_0 = arith.constant 0 : index
    %0 = vector.load %arg0[%c0, %c0_0] : memref<8x32xf32, #tpu.memory_space<vmem>>, vector<8x32xf32>
    %c0_1 = arith.constant 0 : index
    %c0_2 = arith.constant 0 : index
    %1 = vector.load %arg1[%c0_1, %c0_2] : memref<176x128xf32, #tpu.memory_space<vmem>>, vector<1x128xf32>
    %c8 = arith.constant 8 : index
    %c0_3 = arith.constant 0 : index
    %2 = vector.load %arg1[%c8, %c0_3] : memref<176x128xf32, #tpu.memory_space<vmem>>, vector<1x10xf32>
    %c16 = arith.constant 16 : index
    %c0_4 = arith.constant 0 : index
    %3 = vector.load %arg1[%c16, %c0_4] : memref<176x128xf32, #tpu.memory_space<vmem>>, vector<32x128xf32>
    %c48 = arith.constant 48 : index
    %c0_5 = arith.constant 0 : index
    %4 = vector.load %arg1[%c48, %c0_5] : memref<176x128xf32, #tpu.memory_space<vmem>>, vector<128x128xf32>
    %cst = arith.constant dense<0.000000e+00> : vector<8x128xf32>
    %5 = tpu.matmul %0, %3, %cst {dimension_numbers = #tpu.dot_dimension_numbers<[1], [0], [0], [1], [0, 0, 1, 1], [], []>} : vector<8x32xf32>, vector<32x128xf32>, vector<8x128xf32> -> vector<8x128xf32>
    %6 = vector.broadcast %1 : vector<1x128xf32> to vector<8x128xf32>
    %7 = arith.addf %5, %6 : vector<8x128xf32>
    %cst_6 = arith.constant 0.000000e+00 : f32
    %8 = vector.broadcast %cst_6 : f32 to vector<8x128xf32>
    %9 = arith.maximumf %7, %8 : vector<8x128xf32>
    %cst_7 = arith.constant dense<0.000000e+00> : vector<8x128xf32>
    %10 = tpu.matmul %9, %4, %cst_7 {dimension_numbers = #tpu.dot_dimension_numbers<[1], [0], [0], [1], [0, 0, 1, 1], [], []>} : vector<8x128xf32>, vector<128x128xf32>, vector<8x128xf32> -> vector<8x128xf32>
    %11 = vector.extract_strided_slice %10 {offsets = [0, 0], sizes = [8, 10], strides = [1, 1]} : vector<8x128xf32> to vector<8x10xf32>
    %12 = vector.broadcast %2 : vector<1x10xf32> to vector<8x10xf32>
    %13 = arith.addf %11, %12 : vector<8x10xf32>
    %cst_8 = arith.constant dense<0xFF800000> : vector<8xf32>
    %14 = vector.multi_reduction <maximumf>, %13, %cst_8 [1] : vector<8x10xf32> to vector<8xf32>
    %15 = vector.shape_cast %14 : vector<8xf32> to vector<8x1xf32>
    %16 = vector.broadcast %15 : vector<8x1xf32> to vector<8x10xf32>
    %17 = arith.subf %13, %16 : vector<8x10xf32>
    %18 = math.exp %17 : vector<8x10xf32>
    %cst_9 = arith.constant dense<0.000000e+00> : vector<8xf32>
    %19 = vector.multi_reduction <add>, %18, %cst_9 [1] : vector<8x10xf32> to vector<8xf32>
    %20 = vector.shape_cast %19 : vector<8xf32> to vector<8x1xf32>
    %21 = math.log %20 : vector<8x1xf32>
    %22 = vector.broadcast %21 : vector<8x1xf32> to vector<8x10xf32>
    %23 = arith.subf %17, %22 : vector<8x10xf32>
    %c0_10 = arith.constant 0 : index
    %c0_11 = arith.constant 0 : index
    %24 = vector.load %arg2[%c0_10, %c0_11] : memref<8x10xf32, #tpu.memory_space<vmem>>, vector<8x10xf32>
    tpu.vector_store %arg2[%c0_10, %c0_11], %23 {strides = array<i32>} : memref<8x10xf32, #tpu.memory_space<vmem>>, vector<8x10xf32>,
    return
  }
}

</mosaic_0001>

<bundles_post_ra>
// kernel: tpu_custom_call.1
= control target key start
LH: loop header
LB: loop body
LE: loop exit
PB: predicated region body
PF: predicated region fallthrough
CT: control target
= control target key end

     0   :  { %7 = vsyncpa [#allocation3], 0  ;;  %s499_s0 = inlined_call_operand.hbm [shape: f32[8,32], index: 0, kind: input, shape index: {}]   ;;  %s500_s1 = inlined_call_operand.hbm [shape: f32[176,128], index: 1, kind: input, shape index: {}]   ;;  %s501_s2 = inlined_call_operand.hbm [shape: f32[8,10], index: 2, kind: output, shape index: {}]  }
   0x1   :  { %8 = vsyncpa [#allocation6], 0 }
   0x2   :  { %9 = vsyncpa [#allocation4], 0  ;;  %s430_s9 = smov [#allocation2]   ;;  %s431_s11 = smov [#allocation5]  }
   0x3   :  { %s16_s10 = sshll.u32 %s430_s9, 4  ;;  %s25_s12 = sshll.u32 %s431_s11, 4  ;;  %s17_s10 = int_to_ptr.vmem [resolvable:$true] %s16_s10  ;;  %s453_s12 = int_to_ptr.vmem [resolvable:$true] %s25_s12 }
   0x4   :  { %s358_s15 = scalar_lea.hbm %s499_s0, 128 }
   0x5   :  { %p359_p0 = scmp.ne.s32.totalorder %s499_s0, %s358_s15  ;;  %p362_p1 = scmp.lt.u32.totalorder %s358_s15, %s499_s0 }
   0x7   :  { %p364_p2 = pnand %p362_p1, %p359_p0 }
   0x9   :  { %367 = shalt.err (!%p364_p2)
}
   0xa   :  { %s368_s20 = scalar_lea.vmem %s17_s10, 128  ;;  %p373_p4 = scmp.lt.s32.totalorder %s17_s10, %s17_s10 }
   0xb   :  { %p369_p3 = scmp.ne.s32.totalorder %s17_s10, %s368_s20  ;;  %p374_p5 = scmp.lt.s32.totalorder %s368_s20, %s368_s20 }
   0xd   :  { %p375_p6 = por %p374_p5, %p373_p4 }
   0xf   :  { %p376_p7 = pnand %p375_p6, %p369_p3 }
  0x11   :  { %379 = shalt.err (!%p376_p7)
}
  0x12   :  { %19 = dma.hbm_to_vmem [thread:$0]  %s499_s0, 128, %s17_s10, [#allocation3]  }
  0x13   :  { %s380_s25 = scalar_lea.hbm %s500_s1, 2816 }
  0x14   :  { %p381_p8 = scmp.ne.s32.totalorder %s500_s1, %s380_s25  ;;  %p384_p9 = scmp.lt.u32.totalorder %s380_s25, %s500_s1 }
  0x16   :  { %p386_p10 = pnand %p384_p9, %p381_p8 }
  0x18   :  { %389 = shalt.err (!%p386_p10)
}
  0x19   :  { %s390_s30 = scalar_lea.vmem %s453_s12, 2816  ;;  %p395_p12 = scmp.lt.s32.totalorder %s453_s12, %s453_s12 }
  0x1a   :  { %p391_p11 = scmp.ne.s32.totalorder %s453_s12, %s390_s30  ;;  %p396_p13 = scmp.lt.s32.totalorder %s390_s30, %s390_s30 }
  0x1c   :  { %p397_p0 = por %p396_p13, %p395_p12 }
  0x1e   :  { %p398_p1 = pnand %p397_p0, %p391_p11 }
  0x20   :  { %401 = shalt.err (!%p398_p1)
}
  0x21   :  { %s432_s0 = smov 128   ;;  %s433_s3 = smov 8  }
  0x22   :  { %31 = dma.hbm_to_vmem [thread:$0]  %s500_s1, 2816, %s453_s12, [#allocation6], %s432_s0, %s432_s0, %s433_s3  }
  0x23   :  { %424 = dma.done.wait [#allocation3], 128  }
  0x24   :  { %425 = vsyncadd [#allocation3], 4294967168 }
  0x25   :  { %426 = dma.done.wait [#allocation6], 2816  }
  0x26   :  { %427 = vsyncadd [#allocation6], 4294964480  ;;  %v434_v0 = vmov 0.0|0.0   ;;  %vm435_vm0 = vmmov 0   ;;  %v436_v1 = vmov 0.0   ;;  %v41_v2 = vld [vmem:[#allocation5 + $0x10] sm:$0xff] }
  0x27   :  { %316 = vmatprep.subr.bf16.mxu0 %v434_v0  ;;  %278 = vmatprep.mubr.msk.f32.mxu0 %vm435_vm0, %v436_v1  ;;  %v42_v3 = vld [vmem:[#allocation5 + $0x18] sm:$0xff]  ;;  %v43_v4 = vld [vmem:[#allocation5 + $0x20] sm:$0xff]  ;;  %v44_v6 = vld [vmem:[#allocation5 + $0x28] sm:$0xff]  ;;  %vm65_vm1 = vcmask 261120   ;;  %vm215_vm2 = vcmask 80896   ;;  %s437_s1 = smov [#allocation7]  }
  0x28   :  { %322 = vmatprep.subr.bf16.mxu1 %v434_v0  ;;  %313 = vmatprep.mubr.msk.f32.mxu1 %vm435_vm0, %v436_v1  ;;  %v317_v5 = vpack.c.bf16 %v42_v3, %v41_v2  ;;  %v45_v7 = vld [vmem:[#allocation5 + $0x30] sm:$0xff]  ;;  %v46_v8 = vld [vmem:[#allocation5 + $0x38] sm:$0xff]  ;;  %v47_v9 = vld [vmem:[#allocation5 + $0x40] sm:$0xff]  ;;  %v320_v11 = vpack.c.bf16 %v44_v6, %v43_v4  ;;  %s235_s6 = sshll.u32 %s437_s1, 4  ;;  %s236_s6 = int_to_ptr.vmem [resolvable:$true] %s235_s6 }
  0x29   :  { %v48_v10 = vld [vmem:[#allocation5 + $0x48] sm:$0xff]  ;;  %v323_v12 = vpack.c.bf16 %v46_v8, %v45_v7  ;;  %v49_v14 = vld [vmem:[#allocation5 + $0x50] sm:$0xff]  ;;  %v50_v15 = vld [vmem:[#allocation5 + $0x58] sm:$0xff]  ;;  %s402_s7 = scalar_lea.vmem %s236_s6, 128  ;;  %p407_p3 = scmp.lt.s32.totalorder %s236_s6, %s236_s6 }
  0x2a   :  { %318 = vmatpush3.bf16.msra.mxu0 %v317_v5  ;;  %v326_v13 = vpack.c.bf16 %v48_v10, %v47_v9  ;;  %v38_v16 = vld [vmem:[#allocation2] sm:$0xff]  ;;  %v329_v17 = vpack.c.bf16 %v50_v15, %v49_v14  ;;  %v51_v18 = vld [vmem:[#allocation5 + $0x60] sm:$0xff]  ;;  %v52_v19 = vld [vmem:[#allocation5 + $0x68] sm:$0xff]  ;;  %p403_p2 = scmp.ne.s32.totalorder %s236_s6, %s402_s7  ;;  %p408_p4 = scmp.lt.s32.totalorder %s402_s7, %s402_s7 }
  0x2b   :  { %319 = vmatprep.subr.bf16.mxu0 %v434_v0  ;;  %324 = vmatpush3.bf16.msra.mxu1 %v323_v12  ;;  %v332_v20 = vpack.c.bf16 %v52_v19, %v51_v18  ;;  %v53_v21 = vld [vmem:[#allocation5 + $0x70] sm:$0xff]  ;;  %v54_v22 = vld [vmem:[#allocation5 + $0x78] sm:$0xff]  ;;  %v55_v24 = vld [vmem:[#allocation5 + $0x80] sm:$0xff] }
  0x2c   :  { %325 = vmatprep.subr.bf16.mxu1 %v434_v0  ;;  %v335_v23 = vpack.c.bf16 %v54_v22, %v53_v21  ;;  %v56_v25 = vld [vmem:[#allocation5 + $0x88] sm:$0xff]  ;;  %v57_v27 = vld [vmem:[#allocation5 + $0x90] sm:$0xff]  ;;  %v58_v28 = vld [vmem:[#allocation5 + $0x98] sm:$0xff]  ;;  %p409_p5 = por %p408_p4, %p407_p3 }
  0x2d   :  { %v338_v26 = vpack.c.bf16 %v56_v25, %v55_v24  ;;  %v341_v29 = vpack.c.bf16 %v58_v28, %v57_v27  ;;  %v59_v30 = vld [vmem:[#allocation5 + $0xa0] sm:$0xff]  ;;  %v60_v31 = vld [vmem:[#allocation5 + $0xa8] sm:$0xff] }
  0x2e   :  { %321 = vmatpush3.bf16.msra.mxu0 %v320_v11  ;;  %v344_v32 = vpack.c.bf16 %v60_v31, %v59_v30  ;;  %v245_v33 = vld [vmem:[#allocation5] ss:$0 sm:$0xff]  ;;  %v247_v38 = vld [vmem:[#allocation5 + $0x8] ss:$0 sm:$0xff]  ;;  %p410_p6 = pnand %p409_p5, %p403_p2 }
  0x2f   :  { %327 = vmatpush3.bf16.msra.mxu1 %v326_v13 }
  0x30   :  { %328 = vmatprep.subr.bf16.mxu1 %v434_v0 }
  0x31   :  { %279 = vmatmul.mubr.msk.f32.vlgmr.msra.gmra.mrb[0].mxu0 %vm65_vm1, %v38_v16 }
  0x33   :  { %330 = vmatpush3.bf16.msra.mxu1 %v329_v17 }
  0x34   :  { %331 = vmatprep.subr.bf16.mxu1 %v434_v0 }
  0x37   :  { %333 = vmatpush3.bf16.msra.mxu1 %v332_v20 }
  0x38   :  { %334 = vmatprep.subr.bf16.mxu1 %v434_v0 }
  0x3b   :  { %336 = vmatpush3.bf16.msra.mxu1 %v335_v23 }
  0x3c   :  { %337 = vmatprep.subr.bf16.mxu1 %v434_v0 }
  0x3f   :  { %339 = vmatpush3.bf16.msra.mxu1 %v338_v26 }
  0x40   :  { %340 = vmatprep.subr.bf16.mxu1 %v434_v0 }
  0x43   :  { %342 = vmatpush3.bf16.msra.mxu1 %v341_v29 }
  0x44   :  { %343 = vmatprep.subr.bf16.mxu1 %v434_v0 }
  0x47   :  { %345 = vmatpush3.bf16.msra.mxu1 %v344_v32 }
 0x104   :  { %v135_v34 = vpop.f32.mrb[0].mxu0 }
 0x105   :  { %v136_v35 = vadd.f32 %v245_v33, %v135_v34  ;;  %v280_v36 = vpop.f32.mrb[1].mxu0 }
 0x107   :  { %v139_v37 = vmax.f32 %v136_v35, 0.0 }
 0x109   :  { %314 = vmatmul.mubr.f32.vlgmr.msra.gmra.mrb[0].mxu1 %v139_v37 }
 0x1dc   :  { %v206_v39 = vpop.f32.mrb[0].mxu1 }
 0x1dd   :  { %v214_v40 = vadd.f32 %v247_v38, %v206_v39  ;;  %v315_v41 = vpop.f32.mrb[1].mxu1 }
 0x1df   :  { %v216_v42 = vsel %vm215_vm2, %v214_v40, -inf }
 0x1e0   :  { %217 = vmax.xlane.f32.xlu0 %v216_v42 }
 0x26d   :  { %v218_v43 = vpop.xlane.xlu0 %217 }
 0x26e   :  { %v219_v44 = vsub.f32 %v214_v40, %v218_v43 }
 0x270   :  { %v220_v45 = vmul.f32 1.442695, %v219_v44 }
 0x272   :  { %354 = vpow2.f32 %v220_v45 }
 0x27c   :  { %v355_v46 = vpop.eup %354 }
 0x27d   :  { %v222_v47 = vsel %vm215_vm2, %v355_v46, 0.0 }
 0x27e   :  { %223 = vadd.xlane.f32.xlu0 %v222_v47 }
 0x30b   :  { %v224_v48 = vpop.xlane.xlu0 %223 }
 0x30c   :  { %356 = vlog2.f32 %v224_v48 }
 0x316   :  { %v357_v49 = vpop.eup %356 }
 0x317   :  { %v226_v50 = vmul.f32 0.6931472, %v357_v49 }
 0x319   :  { %v227_v51 = vsub.f32 %v219_v44, %v226_v50 }
 0x31b   :  { %228 = vst.msk [vmem:[#allocation7] sm:$0xff] %vm215_vm2, %v227_v51 }
 0x31c   :  { %413 = shalt.err (!%p410_p6)
}
 0x31d   :  { %s414_s10 = scalar_lea.hbm %s501_s2, 128 }
 0x31e   :  { %p415_p7 = scmp.ne.s32.totalorder %s501_s2, %s414_s10  ;;  %p418_p8 = scmp.lt.u32.totalorder %s414_s10, %s501_s2 }
 0x320   :  { %p420_p9 = pnand %p418_p8, %p415_p7 }
 0x322   :  { %423 = shalt.err (!%p420_p9)
}
 0x323   :  { %238 = dma.vmem_to_hbm [thread:$0]  %s236_s6, 128, %s501_s2, [#allocation4]  }
 0x324   :  { %428 = dma.done.wait [#allocation4], 128  }
 0x325   :  { %429 = vsyncadd [#allocation4], 4294967168 }
 0x326   :  { %242 = vsyncpa [#allocation3], 1 }
 0x327   :  { %243 = vsyncpa [#allocation6], 1 }
 0x328   :  { %244 = vsyncpa [#allocation4], 1 }

</bundles_post_ra>
